<compile_context>
chip_gen: v6e
topology: v6e:2x2x1
jax: 0.10.0
libtpu: 0.0.40
codegen_flags: <defaults>
</compile_context>

<pallas_src>
import jax
import jax.numpy as jnp
from jax.experimental import pallas as pl
from jax.experimental.pallas import tpu as pltpu  # noqa: F401  (TPU backend import)


def _conv1x1_kernel(x_ref, w_ref, b_ref, o_ref):
    # x_ref: (M, Cin) f32, w_ref: (Cin, Cout) bf16 (pre-packed), b_ref: (1, Cout) f32
    # o_ref: (M, Cout) f32.  Single step: dot -> +bias -> store.  No scratch, no pl.when.
    x_bf = x_ref[...].astype(jnp.bfloat16)  # in-kernel cast, avoids a wrapper fusion
    acc = jnp.dot(x_bf, w_ref[...], preferred_element_type=jnp.float32)
    o_ref[...] = (acc + b_ref[...]).astype(o_ref.dtype)


def pack_conv1x1_weight(weight_oihw):
    """One-time weight packing (call at model init, outside the per-step hot path).

    (Cout, Cin, 1, 1) f32  ->  (Cin, Cout) bf16, laid out so the kernel reads it
    directly with channels-in on sublanes and channels-out on lanes.
    """
    cout, cin = weight_oihw.shape[0], weight_oihw.shape[1]
    assert weight_oihw.shape[2:] == (1, 1)
    return jnp.transpose(weight_oihw.reshape(cout, cin), (1, 0)).astype(jnp.bfloat16)


def conv2d_1x1(x_nchw, w_packed, bias):
    """1x1 conv (stride 1) via a single-step Pallas matmul kernel.

    x_nchw:   (N, Cin, H, W)   with H == W == 1 here
    w_packed: (Cin, Cout)      bf16, from pack_conv1x1_weight
    bias:     (Cout,)          f32
    returns   (N, Cout, H, W)  in x's dtype
    """
    n, cin, h, w = x_nchw.shape
    cin_w, cout = w_packed.shape
    assert cin_w == cin

    m = n * h * w

    # (N, Cin, H, W) -> (M, Cin): rows over N*H*W, channels on the lane (last) axis.
    # For H == W == 1 this is a pure reshape (no data movement).
    x2d = jnp.transpose(x_nchw, (0, 2, 3, 1)).reshape(m, cin)
    b2d = bias.astype(jnp.float32).reshape(1, cout)

    out2d = pl.pallas_call(
        _conv1x1_kernel,
        out_shape=jax.ShapeDtypeStruct((m, cout), jnp.float32),
        grid=(1,),
        in_specs=[
            pl.BlockSpec((m, cin), lambda i: (0, 0)),
            pl.BlockSpec((cin, cout), lambda i: (0, 0)),
            pl.BlockSpec((1, cout), lambda i: (0, 0)),
        ],
        out_specs=pl.BlockSpec((m, cout), lambda i: (0, 0)),
    )(x2d, w_packed, b2d)

    return jnp.transpose(out2d.reshape(n, h, w, cout), (0, 3, 1, 2)).astype(x_nchw.dtype)


if __name__ == "__main__":
    key = jax.random.PRNGKey(0)
    k_x, k_w, k_b = jax.random.split(key, 3)

    N, CIN, COUT, H, W = 1, 2304, 96, 1, 1

    # Deterministic parameter init (PyTorch-like uniform bounds for Conv2d).
    fan_in = CIN * 1 * 1
    bound = 1.0 / (fan_in ** 0.5)
    weight = jax.random.uniform(k_w, (COUT, CIN, 1, 1), jnp.float32, -bound, bound)
    bias = jax.random.uniform(k_b, (COUT,), jnp.float32, -bound, bound)

    # Input consistent with the module's forward: [1, 2304, 1, 1].
    x = jax.random.normal(k_x, (N, CIN, H, W), jnp.float32)

    # One-time weight packing (model init), then the jitted per-call path.
    w_packed = pack_conv1x1_weight(weight)
    forward = jax.jit(conv2d_1x1)

    y = forward(x, w_packed, bias)
    jax.block_until_ready(y)
    assert y.shape == (N, COUT, H, W)

    # Reference 1: same bf16-cast operands, exact f32 accumulation (tight tolerance).
    x_bf = x.reshape(N, CIN).astype(jnp.bfloat16).astype(jnp.float32)
    w_bf = weight.reshape(COUT, CIN).astype(jnp.bfloat16).astype(jnp.float32)
    ref_bf = (jnp.dot(x_bf, w_bf.T, precision=jax.lax.Precision.HIGHEST)
              + bias).reshape(N, COUT, 1, 1)
    assert jnp.allclose(y, ref_bf, atol=1e-3, rtol=1e-3)

    # Reference 2: pure f32 math (loose tolerance covers the bf16 operand casts).
    ref_f32 = (jnp.dot(x.reshape(N, CIN), weight.reshape(COUT, CIN).T,
                       precision=jax.lax.Precision.HIGHEST)
               + bias).reshape(N, COUT, 1, 1)
    assert jnp.allclose(y, ref_f32, atol=5e-2, rtol=5e-2)

    print("KERNEL_OK")
</pallas_src>

<mosaic_0001>
module attributes {stable_mosaic.version = 11 : i64} {
  func.func @_conv1x1_kernel(%arg0: i32, %arg1: memref<1x2304xf32, #tpu.memory_space<vmem>>, %arg2: memref<2304x96xbf16, #tpu.memory_space<vmem>>, %arg3: memref<1x96xf32, #tpu.memory_space<vmem>>, %arg4: memref<1x96xf32, #tpu.memory_space<vmem>>) attributes {dimension_semantics = [#tpu.dimension_semantics<arbitrary>], iteration_bounds = array<i64: 1>, scalar_prefetch = 0 : i64, scratch_operands = 0 : i64, tpu.core_type = #tpu.core_type<tc>, window_params = [{pipeline_mode = #tpu.pipeline_mode<synchronous>, transform_indices = @transform_0, window_bounds = array<i64: 1, 2304>}, {pipeline_mode = #tpu.pipeline_mode<synchronous>, transform_indices = @transform_1, window_bounds = array<i64: 2304, 96>}, {pipeline_mode = #tpu.pipeline_mode<synchronous>, transform_indices = @transform_2, window_bounds = array<i64: 1, 96>}, {pipeline_mode = #tpu.pipeline_mode<synchronous>, transform_indices = @transform_3, window_bounds = array<i64: 1, 96>}]} {
    %c0 = arith.constant 0 : index
    %c0_0 = arith.constant 0 : index
    %0 = vector.load %arg1[%c0, %c0_0] : memref<1x2304xf32, #tpu.memory_space<vmem>>, vector<1x2304xf32>
    %1 = arith.truncf %0 : vector<1x2304xf32> to vector<1x2304xbf16>
    %c0_1 = arith.constant 0 : index
    %c0_2 = arith.constant 0 : index
    %2 = vector.load %arg2[%c0_1, %c0_2] : memref<2304x96xbf16, #tpu.memory_space<vmem>>, vector<2304x96xbf16>
    %cst = arith.constant dense<0.000000e+00> : vector<1x96xf32>
    %3 = tpu.matmul %1, %2, %cst {dimension_numbers = #tpu.dot_dimension_numbers<[1], [0], [0], [1], [0, 0, 1, 1], [], []>} : vector<1x2304xbf16>, vector<2304x96xbf16>, vector<1x96xf32> -> vector<1x96xf32>
    %c0_3 = arith.constant 0 : index
    %c0_4 = arith.constant 0 : index
    %4 = vector.load %arg3[%c0_3, %c0_4] : memref<1x96xf32, #tpu.memory_space<vmem>>, vector<1x96xf32>
    %5 = arith.addf %3, %4 : vector<1x96xf32>
    %c0_5 = arith.constant 0 : index
    %c0_6 = arith.constant 0 : index
    %6 = vector.load %arg4[%c0_5, %c0_6] : memref<1x96xf32, #tpu.memory_space<vmem>>, vector<1x96xf32>
    tpu.vector_store %arg4[%c0_5, %c0_6], %5 {strides = array<i32>} : memref<1x96xf32, #tpu.memory_space<vmem>>, vector<1x96xf32>,
    return
  }
  func.func @transform_0(%arg0: i32) -> (i32, i32) {
    %c0_i32 = arith.constant 0 : i32
    %c0_i32_0 = arith.constant 0 : i32
    %c0_i32_1 = arith.constant 0 : i32
    return %c0_i32, %c0_i32_0 : i32, i32
  }
  func.func @transform_1(%arg0: i32) -> (i32, i32) {
    %c0_i32 = arith.constant 0 : i32
    %c0_i32_0 = arith.constant 0 : i32
    %c0_i32_1 = arith.constant 0 : i32
    return %c0_i32, %c0_i32_0 : i32, i32
  }
  func.func @transform_2(%arg0: i32) -> (i32, i32) {
    %c0_i32 = arith.constant 0 : i32
    %c0_i32_0 = arith.constant 0 : i32
    %c0_i32_1 = arith.constant 0 : i32
    return %c0_i32, %c0_i32_0 : i32, i32
  }
  func.func @transform_3(%arg0: i32) -> (i32, i32) {
    %c0_i32 = arith.constant 0 : i32
    %c0_i32_0 = arith.constant 0 : i32
    %c0_i32_1 = arith.constant 0 : i32
    return %c0_i32, %c0_i32_0 : i32, i32
  }
}

</mosaic_0001>

<bundles_post_ra>
// kernel: conv2d_1x1.1
= control target key start
LH: loop header
LB: loop body
LE: loop exit
PB: predicated region body
PF: predicated region fallthrough
CT: control target
= control target key end

     0   :  { %v22_v17 = vlaneseq  ;;  %s2700_s0 = inlined_call_operand.vmem [shape: f32[1,2304], index: 0, kind: input, shape index: {}]   ;;  %s2701_s1 = inlined_call_operand.vmem [shape: bf16[2304,96], index: 1, kind: input, shape index: {}]   ;;  %s2702_s2 = inlined_call_operand.vmem [shape: f32[1,96], index: 2, kind: input, shape index: {}]   ;;  %s2703_s3 = inlined_call_operand.hbm [shape: f32[1,96], index: 3, kind: output, shape index: {}]  }
   0x1   :  { %v2002_v0 = vld [vmem:[%s2701_s1 + $0x78] sm:$0xff]   ;;  %v2006_v4 = vld [vmem:[%s2701_s1 + $0x70] sm:$0xff]   ;;  %v2010_v8 = vld [vmem:[%s2701_s1 + $0x68] sm:$0xff]  }
   0x2   :  { %v2003_v1 = vld [vmem:[%s2701_s1 + $0x38] sm:$0xff]   ;;  %1803 = vmatprep.subr.bf16.mxu0 %v2002_v0  ;;  %v2007_v5 = vld [vmem:[%s2701_s1 + $0x30] sm:$0xff]   ;;  %v2011_v9 = vld [vmem:[%s2701_s1 + $0x28] sm:$0xff]   ;;  %v2252_v22 = vshrl.u32 %v22_v17, 7 }
   0x3   :  { %v2004_v2 = vld [vmem:[%s2701_s1 + $0xf8] sm:$0xff]   ;;  %1804 = vmatpush3.bf16.msra.mxu0 %v2003_v1  ;;  %v2008_v6 = vld [vmem:[%s2701_s1 + $0xf0] sm:$0xff]   ;;  %v2012_v10 = vld [vmem:[%s2701_s1 + $0xe8] sm:$0xff]  }
   0x4   :  { %v2005_v3 = vld [vmem:[%s2701_s1 + $0xb8] sm:$0xff]   ;;  %1825 = vmatprep.subr.bf16.mxu1 %v2004_v2  ;;  %1805 = vmatprep.subr.bf16.mxu0 %v2006_v4  ;;  %v2009_v7 = vld [vmem:[%s2701_s1 + $0xb0] sm:$0xff]   ;;  %v2013_v11 = vld [vmem:[%s2701_s1 + $0xa8] sm:$0xff]   ;;  %v2267_v27 = vsub.s32 1, %v2252_v22  ;;  %v2273_v29 = vsub.s32 0, %v2252_v22  ;;  %v36_v31 = vsub.s32 3, %v2252_v22 }
   0x5   :  { %1826 = vmatpush3.bf16.msra.mxu1 %v2005_v3  ;;  %v2014_v12 = vld [vmem:[%s2701_s1 + $0x60] sm:$0xff]   ;;  %v2018_v16 = vld [vmem:[%s2701_s1 + $0x58] sm:$0xff]   ;;  %v2022_v21 = vld [vmem:[%s2701_s1 + $0x50] sm:$0xff]   ;;  %v32_v33 = vsub.s32 2, %v2252_v22  ;;  %v44_v35 = vsub.s32 5, %v2252_v22  ;;  %v52_v37 = vsub.s32 7, %v2252_v22 }
   0x6   :  { %1827 = vmatprep.subr.bf16.mxu1 %v2008_v6  ;;  %v2015_v13 = vld [vmem:[%s2701_s1 + $0x20] sm:$0xff]   ;;  %v2019_v18 = vld [vmem:[%s2701_s1 + $0x18] sm:$0xff]   ;;  %v2023_v23 = vld [vmem:[%s2701_s1 + $0x10] sm:$0xff]  }
   0x7   :  { %1806 = vmatpush3.bf16.msra.mxu0 %v2007_v5  ;;  %v2016_v14 = vld [vmem:[%s2701_s1 + $0xe0] sm:$0xff]   ;;  %v2020_v19 = vld [vmem:[%s2701_s1 + $0xd8] sm:$0xff]   ;;  %v2024_v24 = vld [vmem:[%s2701_s1 + $0xd0] sm:$0xff]  }
   0x8   :  { %1807 = vmatprep.subr.bf16.mxu0 %v2010_v8  ;;  %v2017_v15 = vld [vmem:[%s2701_s1 + $0xa0] sm:$0xff]   ;;  %v2021_v20 = vld [vmem:[%s2701_s1 + $0x98] sm:$0xff]   ;;  %v2025_v25 = vld [vmem:[%s2701_s1 + $0x90] sm:$0xff]  }
   0x9   :  { %1828 = vmatpush3.bf16.msra.mxu1 %v2009_v7  ;;  %v2026_v26 = vld [vmem:[%s2701_s1 + $0x48] sm:$0xff]   ;;  %v2030_v34 = vld [vmem:[%s2701_s1 + $0x40] sm:$0xff]   ;;  %v2034_v45 = vld [vmem:[%s2701_s1 + $0x178] sm:$0xff]  }
   0xa   :  { %1829 = vmatprep.subr.bf16.mxu1 %v2012_v10  ;;  %v2027_v28 = vld [vmem:[%s2701_s1 + $0x8] sm:$0xff]   ;;  %v2031_v36 = vld [vmem:[%s2701_s1] sm:$0xff]   ;;  %v2035_v51 = vld [vmem:[%s2701_s1 + $0x138] sm:$0xff]  }
   0xb   :  { %1808 = vmatpush3.bf16.msra.mxu0 %v2011_v9  ;;  %v2028_v30 = vld [vmem:[%s2701_s1 + $0xc8] sm:$0xff]   ;;  %v2032_v38 = vld [vmem:[%s2701_s1 + $0xc0] sm:$0xff]   ;;  %v2036_v53 = vld [vmem:[%s2701_s1 + $0x1f8] sm:$0xff]  }
   0xc   :  { %1809 = vmatprep.subr.bf16.mxu0 %v2014_v12  ;;  %v2029_v32 = vld [vmem:[%s2701_s1 + $0x88] sm:$0xff]   ;;  %v2297_v39 = vld [vmem:[%s2700_s0] sm:$0xff]  ;;  %v2037_v54 = vld [vmem:[%s2701_s1 + $0x1b8] sm:$0xff]  }
   0xd   :  { %1830 = vmatpush3.bf16.msra.mxu1 %v2013_v11  ;;  %v29_v40 = vrot.slane %v2297_v39, %v2267_v27  ;;  %v2033_v41 = vld [vmem:[%s2701_s1 + $0x80] sm:$0xff]   ;;  %v25_v42 = vrot.slane %v2297_v39, %v2273_v29  ;;  %v37_v43 = vrot.slane %v2297_v39, %v36_v31  ;;  %v33_v44 = vrot.slane %v2297_v39, %v32_v33  ;;  %v2038_v57 = vld [vmem:[%s2701_s1 + $0x170] sm:$0xff]   ;;  %v2042_v61 = vld [vmem:[%s2701_s1 + $0x168] sm:$0xff]  }
   0xe   :  { %1831 = vmatprep.subr.bf16.mxu1 %v2016_v14  ;;  %v45_v46 = vrot.slane %v2297_v39, %v44_v35  ;;  %v53_v47 = vrot.slane %v2297_v39, %v52_v37  ;;  %v2039_v58 = vld [vmem:[%s2701_s1 + $0x130] sm:$0xff]   ;;  %v2043_v62 = vld [vmem:[%s2701_s1 + $0x128] sm:$0xff]   ;;  %v2046_v1 = vld [vmem:[%s2701_s1 + $0x160] sm:$0xff]   ;;  %v40_v14 = vsub.s32 4, %v2252_v22 }
   0xf   :  { %1810 = vmatpush3.bf16.msra.mxu0 %v2015_v13  ;;  %v113_v48 = vpack.c.bf16 %v29_v40, %v29_v40  ;;  %v112_v49 = vpack.c.bf16 %v25_v42, %v25_v42  ;;  %v115_v50 = vpack.c.bf16 %v37_v43, %v37_v43  ;;  %v114_v52 = vpack.c.bf16 %v33_v44, %v33_v44  ;;  %v2040_v59 = vld [vmem:[%s2701_s1 + $0x1f0] sm:$0xff]   ;;  %v2044_v63 = vld [vmem:[%s2701_s1 + $0x1e8] sm:$0xff]   ;;  %v2047_v2 = vld [vmem:[%s2701_s1 + $0x120] sm:$0xff]  }
  0x10   :  { %1811 = vmatprep.subr.bf16.mxu0 %v2018_v16  ;;  %v117_v55 = vpack.c.bf16 %v45_v46, %v45_v46  ;;  %v119_v56 = vpack.c.bf16 %v53_v47, %v53_v47  ;;  %v2041_v60 = vld [vmem:[%s2701_s1 + $0x1b0] sm:$0xff]   ;;  %v2045_v0 = vld [vmem:[%s2701_s1 + $0x1a8] sm:$0xff]   ;;  %v2048_v3 = vld [vmem:[%s2701_s1 + $0x1e0] sm:$0xff]   ;;  %v48_v16 = vsub.s32 6, %v2252_v22 }
  0x11   :  { %1832 = vmatpush3.bf16.msra.mxu1 %v2017_v15  ;;  %1315 = vmatprep.mubr.bf16.mxu0 %v113_v48  ;;  %v2049_v4 = vld [vmem:[%s2701_s1 + $0x1a0] sm:$0xff]   ;;  %v2050_v5 = vld [vmem:[%s2701_s1 + $0x158] sm:$0xff]   ;;  %v2054_v9 = vld [vmem:[%s2701_s1 + $0x150] sm:$0xff]  }
  0x12   :  { %1833 = vmatprep.subr.bf16.mxu1 %v2020_v19  ;;  %1355 = vmatprep.mubr.bf16.mxu1 %v115_v50  ;;  %v2051_v6 = vld [vmem:[%s2701_s1 + $0x118] sm:$0xff]   ;;  %v2055_v10 = vld [vmem:[%s2701_s1 + $0x110] sm:$0xff]   ;;  %v2058_v13 = vld [vmem:[%s2701_s1 + $0x148] sm:$0xff]  }
  0x13   :  { %1812 = vmatpush3.bf16.msra.mxu0 %v2019_v18  ;;  %v2052_v7 = vld [vmem:[%s2701_s1 + $0x1d8] sm:$0xff]   ;;  %v2056_v11 = vld [vmem:[%s2701_s1 + $0x1d0] sm:$0xff]   ;;  %v2059_v15 = vld [vmem:[%s2701_s1 + $0x108] sm:$0xff]  }
  0x14   :  { %1813 = vmatprep.subr.bf16.mxu0 %v2022_v21  ;;  %v2053_v8 = vld [vmem:[%s2701_s1 + $0x198] sm:$0xff]   ;;  %v2057_v12 = vld [vmem:[%s2701_s1 + $0x190] sm:$0xff]   ;;  %v2060_v17 = vld [vmem:[%s2701_s1 + $0x1c8] sm:$0xff]  }
  0x15   :  { %1834 = vmatpush3.bf16.msra.mxu1 %v2021_v20  ;;  %v2061_v18 = vld [vmem:[%s2701_s1 + $0x188] sm:$0xff]   ;;  %v2062_v19 = vld [vmem:[%s2701_s1 + $0x140] sm:$0xff]   ;;  %v41_v20 = vrot.slane %v2297_v39, %v40_v14  ;;  %v2072_v40 = vld [vmem:[%s2701_s1 + $0x2f0] sm:$0xff]  }
  0x16   :  { %1835 = vmatprep.subr.bf16.mxu1 %v2024_v24  ;;  %v2063_v21 = vld [vmem:[%s2701_s1 + $0x100] sm:$0xff]   ;;  %v2074_v42 = vld [vmem:[%s2701_s1 + $0x268] sm:$0xff]   ;;  %v2082_v50 = vld [vmem:[%s2701_s1 + $0x258] sm:$0xff]  }
  0x17   :  { %1814 = vmatpush3.bf16.msra.mxu0 %v2023_v23  ;;  %v49_v23 = vrot.slane %v2297_v39, %v48_v16  ;;  %v2064_v24 = vld [vmem:[%s2701_s1 + $0x1c0] sm:$0xff]   ;;  %v2071_v39 = vld [vmem:[%s2701_s1 + $0x230] sm:$0xff]   ;;  %v2075_v43 = vld [vmem:[%s2701_s1 + $0x228] sm:$0xff]  }
  0x18   :  { %1815 = vmatprep.subr.bf16.mxu0 %v2026_v26  ;;  %v116_v26 = vpack.c.bf16 %v41_v20, %v41_v20  ;;  %v2076_v44 = vld [vmem:[%s2701_s1 + $0x2e8] sm:$0xff]   ;;  %v2078_v46 = vld [vmem:[%s2701_s1 + $0x260] sm:$0xff]   ;;  %v2105_v20 = vld [vmem:[%s2701_s1 + $0x3b0] sm:$0xff]  }
  0x19   :  { %1836 = vmatpush3.bf16.msra.mxu1 %v2025_v25  ;;  %v2065_v25 = vld [vmem:[%s2701_s1 + $0x180] sm:$0xff]   ;;  %v2131_v22 = vld [vmem:[%s2701_s1 + $0x438] sm:$0xff]  }
  0x1a   :  { %1837 = vmatprep.subr.bf16.mxu1 %v2028_v30  ;;  %v2067_v30 = vld [vmem:[%s2701_s1 + $0x238] sm:$0xff]   ;;  %v2079_v47 = vld [vmem:[%s2701_s1 + $0x220] sm:$0xff]  }
  0x1b   :  { %1816 = vmatpush3.bf16.msra.mxu0 %v2027_v28  ;;  %v2066_v28 = vld [vmem:[%s2701_s1 + $0x278] sm:$0xff]   ;;  %v2080_v48 = vld [vmem:[%s2701_s1 + $0x2e0] sm:$0xff]  }
  0x1c   :  { %1817 = vmatprep.subr.bf16.mxu0 %v2030_v34  ;;  %v2068_v34 = vld [vmem:[%s2701_s1 + $0x2f8] sm:$0xff]  }
  0x1d   :  { %1838 = vmatpush3.bf16.msra.mxu1 %v2029_v32  ;;  %v118_v32 = vpack.c.bf16 %v49_v23, %v49_v23  ;;  %v2107_v23 = vld [vmem:[%s2701_s1 + $0x328] sm:$0xff]  }
  0x1e   :  { %1839 = vmatprep.subr.bf16.mxu1 %v2032_v38  ;;  %v2070_v38 = vld [vmem:[%s2701_s1 + $0x270] sm:$0xff]  }
  0x1f   :  { %1818 = vmatpush3.bf16.msra.mxu0 %v2031_v36  ;;  %v2069_v36 = vld [vmem:[%s2701_s1 + $0x2b8] sm:$0xff]  }
  0x20   :  { %1847 = vmatprep.subr.bf16.mxu0 %v2034_v45  ;;  %v2077_v45 = vld [vmem:[%s2701_s1 + $0x2a8] sm:$0xff]  }
  0x21   :  { %1840 = vmatpush3.bf16.msra.mxu1 %v2033_v41  ;;  %v2073_v41 = vld [vmem:[%s2701_s1 + $0x2b0] sm:$0xff]  }
  0x22   :  { %1316 = vmatmul.mubr.bf16.vlgmr.msra.gmra.mxu0 %v112_v49  ;;  %1869 = vmatprep.subr.bf16.mxu1 %v2036_v53  ;;  %v2081_v49 = vld [vmem:[%s2701_s1 + $0x2a0] sm:$0xff]   ;;  %v2085_v53 = vld [vmem:[%s2701_s1 + $0x298] sm:$0xff]  }
  0x23   :  { %1848 = vmatpush3.bf16.msra.mxu0 %v2035_v51  ;;  %1395 = vmatprep.mubr.bf16.mxu0 %v117_v55  ;;  %v2083_v51 = vld [vmem:[%s2701_s1 + $0x218] sm:$0xff]   ;;  %v2087_v55 = vld [vmem:[%s2701_s1 + $0x210] sm:$0xff]  }
  0x24   :  { %1356 = vmatmul.mubr.bf16.vlgmr.msra.gmra.mxu1 %v114_v52  ;;  %1849 = vmatprep.subr.bf16.mxu0 %v2038_v57  ;;  %v2084_v52 = vld [vmem:[%s2701_s1 + $0x2d8] sm:$0xff]   ;;  %v2089_v57 = vld [vmem:[%s2701_s1 + $0x290] sm:$0xff]  }
  0x25   :  { %1870 = vmatpush3.bf16.msra.mxu1 %v2037_v54  ;;  %1435 = vmatprep.mubr.bf16.mxu1 %v119_v56  ;;  %v2086_v54 = vld [vmem:[%s2701_s1 + $0x250] sm:$0xff]  }
  0x26   :  { %1871 = vmatprep.subr.bf16.mxu1 %v2040_v59  ;;  %v2088_v56 = vld [vmem:[%s2701_s1 + $0x2d0] sm:$0xff]   ;;  %v2091_v59 = vld [vmem:[%s2701_s1 + $0x208] sm:$0xff]  }
  0x27   :  { %1850 = vmatpush3.bf16.msra.mxu0 %v2039_v58  ;;  %v2090_v58 = vld [vmem:[%s2701_s1 + $0x248] sm:$0xff]  }
  0x28   :  { %1851 = vmatprep.subr.bf16.mxu0 %v2042_v61  ;;  %v2093_v61 = vld [vmem:[%s2701_s1 + $0x288] sm:$0xff]  }
  0x29   :  { %1872 = vmatpush3.bf16.msra.mxu1 %v2041_v60  ;;  %v2092_v60 = vld [vmem:[%s2701_s1 + $0x2c8] sm:$0xff]  }
  0x2a   :  { %1873 = vmatprep.subr.bf16.mxu1 %v2044_v63  ;;  %v2095_v63 = vld [vmem:[%s2701_s1 + $0x200] sm:$0xff]  }
  0x2b   :  { %1852 = vmatpush3.bf16.msra.mxu0 %v2043_v62  ;;  %v2094_v62 = vld [vmem:[%s2701_s1 + $0x240] sm:$0xff]  }
  0x2c   :  { %1853 = vmatprep.subr.bf16.mxu0 %v2046_v1  ;;  %v2518_v1 = vld [vmem:[%s2700_s0 + $0x8] sm:$0xff] }
  0x2d   :  { %1874 = vmatpush3.bf16.msra.mxu1 %v2045_v0  ;;  %v2096_v0 = vld [vmem:[%s2701_s1 + $0x2c0] sm:$0xff]  }
  0x2e   :  { %1875 = vmatprep.subr.bf16.mxu1 %v2048_v3  ;;  %v2097_v3 = vld [vmem:[%s2701_s1 + $0x280] sm:$0xff]  }
  0x2f   :  { %1854 = vmatpush3.bf16.msra.mxu0 %v2047_v2  ;;  %v61_v2 = vrot.slane %v2518_v1, %v2267_v27 }
  0x30   :  { %1855 = vmatprep.subr.bf16.mxu0 %v2050_v5  ;;  %v69_v5 = vrot.slane %v2518_v1, %v36_v31 }
  0x31   :  { %1876 = vmatpush3.bf16.msra.mxu1 %v2049_v4  ;;  %v57_v4 = vrot.slane %v2518_v1, %v2273_v29 }
  0x32   :  { %1877 = vmatprep.subr.bf16.mxu1 %v2052_v7  ;;  %v2098_v7 = vld [vmem:[%s2701_s1 + $0x378] sm:$0xff]  }
  0x33   :  { %1856 = vmatpush3.bf16.msra.mxu0 %v2051_v6  ;;  %v65_v6 = vrot.slane %v2518_v1, %v32_v33  ;;  %v120_v31 = vpack.c.bf16 %v57_v4, %v57_v4  ;;  %v2099_v33 = vld [vmem:[%s2701_s1 + $0x338] sm:$0xff]  }
  0x34   :  { %1857 = vmatprep.subr.bf16.mxu0 %v2054_v9  ;;  %v85_v9 = vrot.slane %v2518_v1, %v52_v37 }
  0x35   :  { %1878 = vmatpush3.bf16.msra.mxu1 %v2053_v8  ;;  %v77_v8 = vrot.slane %v2518_v1, %v44_v35  ;;  %v2101_v35 = vld [vmem:[%s2701_s1 + $0x3b8] sm:$0xff]  }
  0x36   :  { %1879 = vmatprep.subr.bf16.mxu1 %v2056_v11  ;;  %v123_v11 = vpack.c.bf16 %v69_v5, %v69_v5 }
  0x37   :  { %1858 = vmatpush3.bf16.msra.mxu0 %v2055_v10  ;;  %v121_v10 = vpack.c.bf16 %v61_v2, %v61_v2  ;;  %v125_v37 = vpack.c.bf16 %v77_v8, %v77_v8 }
  0x38   :  { %1859 = vmatprep.subr.bf16.mxu0 %v2058_v13  ;;  %v2100_v13 = vld [vmem:[%s2701_s1 + $0x3f8] sm:$0xff]  }
  0x39   :  { %1880 = vmatpush3.bf16.msra.mxu1 %v2057_v12  ;;  %v122_v12 = vpack.c.bf16 %v65_v6, %v65_v6 }
  0x3a   :  { %1881 = vmatprep.subr.bf16.mxu1 %v2060_v17  ;;  %v2102_v17 = vld [vmem:[%s2701_s1 + $0x370] sm:$0xff]  }
  0x3b   :  { %1860 = vmatpush3.bf16.msra.mxu0 %v2059_v15  ;;  %v127_v15 = vpack.c.bf16 %v85_v9, %v85_v9 }
  0x3c   :  { %1861 = vmatprep.subr.bf16.mxu0 %v2062_v19  ;;  %v2104_v19 = vld [vmem:[%s2701_s1 + $0x3f0] sm:$0xff]  }
  0x3d   :  { %1882 = vmatpush3.bf16.msra.mxu1 %v2061_v18  ;;  %v2103_v18 = vld [vmem:[%s2701_s1 + $0x330] sm:$0xff]  }
  0x3e   :  { %1883 = vmatprep.subr.bf16.mxu1 %v2064_v24  ;;  %v2108_v24 = vld [vmem:[%s2701_s1 + $0x3e8] sm:$0xff]  }
  0x3f   :  { %1862 = vmatpush3.bf16.msra.mxu0 %v2063_v21  ;;  %v2106_v21 = vld [vmem:[%s2701_s1 + $0x368] sm:$0xff]  }
  0x40   :  { %1891 = vmatprep.subr.bf16.mxu0 %v2066_v28  ;;  %v2111_v28 = vld [vmem:[%s2701_s1 + $0x320] sm:$0xff]  }
  0x41   :  { %1884 = vmatpush3.bf16.msra.mxu1 %v2065_v25  ;;  %v2109_v25 = vld [vmem:[%s2701_s1 + $0x3a8] sm:$0xff]  }
  0x42   :  { %1396 = vmatmul.mubr.bf16.vlgmr.msra.gmra.mxu0 %v116_v26  ;;  %1913 = vmatprep.subr.bf16.mxu1 %v2068_v34  ;;  %v2110_v26 = vld [vmem:[%s2701_s1 + $0x360] sm:$0xff]   ;;  %v2114_v34 = vld [vmem:[%s2701_s1 + $0x358] sm:$0xff]  }
  0x43   :  { %1892 = vmatpush3.bf16.msra.mxu0 %v2067_v30  ;;  %1475 = vmatprep.mubr.bf16.mxu0 %v121_v10  ;;  %v2112_v30 = vld [vmem:[%s2701_s1 + $0x3e0] sm:$0xff]  }
  0x44   :  { %1436 = vmatmul.mubr.bf16.vlgmr.msra.gmra.mxu1 %v118_v32  ;;  %1893 = vmatprep.subr.bf16.mxu0 %v2070_v38  ;;  %v2113_v32 = vld [vmem:[%s2701_s1 + $0x3a0] sm:$0xff]   ;;  %v2116_v38 = vld [vmem:[%s2701_s1 + $0x3d8] sm:$0xff]  }
  0x45   :  { %1914 = vmatpush3.bf16.msra.mxu1 %v2069_v36  ;;  %1515 = vmatprep.mubr.bf16.mxu1 %v123_v11  ;;  %v2115_v36 = vld [vmem:[%s2701_s1 + $0x318] sm:$0xff]  }
  0x46   :  { %1915 = vmatprep.subr.bf16.mxu1 %v2072_v40  ;;  %v2118_v40 = vld [vmem:[%s2701_s1 + $0x350] sm:$0xff]  }
  0x47   :  { %1894 = vmatpush3.bf16.msra.mxu0 %v2071_v39  ;;  %v2117_v39 = vld [vmem:[%s2701_s1 + $0x398] sm:$0xff]  }
  0x48   :  { %1895 = vmatprep.subr.bf16.mxu0 %v2074_v42  ;;  %v2120_v42 = vld [vmem:[%s2701_s1 + $0x3d0] sm:$0xff]  }
  0x49   :  { %1916 = vmatpush3.bf16.msra.mxu1 %v2073_v41  ;;  %v2119_v41 = vld [vmem:[%s2701_s1 + $0x310] sm:$0xff]  }
  0x4a   :  { %1917 = vmatprep.subr.bf16.mxu1 %v2076_v44  ;;  %v2122_v44 = vld [vmem:[%s2701_s1 + $0x348] sm:$0xff]  }
  0x4b   :  { %1896 = vmatpush3.bf16.msra.mxu0 %v2075_v43  ;;  %v2121_v43 = vld [vmem:[%s2701_s1 + $0x390] sm:$0xff]  }
  0x4c   :  { %1897 = vmatprep.subr.bf16.mxu0 %v2078_v46  ;;  %v2124_v46 = vld [vmem:[%s2701_s1 + $0x3c8] sm:$0xff]  }
  0x4d   :  { %1918 = vmatpush3.bf16.msra.mxu1 %v2077_v45  ;;  %v2123_v45 = vld [vmem:[%s2701_s1 + $0x308] sm:$0xff]  }
  0x4e   :  { %1919 = vmatprep.subr.bf16.mxu1 %v2080_v48  ;;  %v2126_v48 = vld [vmem:[%s2701_s1 + $0x340] sm:$0xff]  }
  0x4f   :  { %1898 = vmatpush3.bf16.msra.mxu0 %v2079_v47  ;;  %v2125_v47 = vld [vmem:[%s2701_s1 + $0x388] sm:$0xff]  }
  0x50   :  { %1899 = vmatprep.subr.bf16.mxu0 %v2082_v50  ;;  %v2127_v50 = vld [vmem:[%s2701_s1 + $0x300] sm:$0xff]  }
  0x51   :  { %1920 = vmatpush3.bf16.msra.mxu1 %v2081_v49  ;;  %v73_v49 = vrot.slane %v2518_v1, %v40_v14 }
  0x52   :  { %1921 = vmatprep.subr.bf16.mxu1 %v2084_v52  ;;  %v2128_v52 = vld [vmem:[%s2701_s1 + $0x3c0] sm:$0xff]  }
  0x53   :  { %1900 = vmatpush3.bf16.msra.mxu0 %v2083_v51  ;;  %v81_v51 = vrot.slane %v2518_v1, %v48_v16  ;;  %v124_v14 = vpack.c.bf16 %v73_v49, %v73_v49 }
  0x54   :  { %1901 = vmatprep.subr.bf16.mxu0 %v2086_v54  ;;  %v2130_v54 = vld [vmem:[%s2701_s1 + $0x478] sm:$0xff]  }
  0x55   :  { %1922 = vmatpush3.bf16.msra.mxu1 %v2085_v53  ;;  %v2129_v53 = vld [vmem:[%s2701_s1 + $0x380] sm:$0xff]   ;;  %v126_v16 = vpack.c.bf16 %v81_v51, %v81_v51 }
  0x56   :  { %1923 = vmatprep.subr.bf16.mxu1 %v2088_v56  ;;  %v2133_v56 = vld [vmem:[%s2701_s1 + $0x430] sm:$0xff]  }
  0x57   :  { %1902 = vmatpush3.bf16.msra.mxu0 %v2087_v55  ;;  %v2132_v55 = vld [vmem:[%s2701_s1 + $0x470] sm:$0xff]  }
  0x58   :  { %1903 = vmatprep.subr.bf16.mxu0 %v2090_v58  ;;  %v2135_v58 = vld [vmem:[%s2701_s1 + $0x428] sm:$0xff]  }
  0x59   :  { %1924 = vmatpush3.bf16.msra.mxu1 %v2089_v57  ;;  %v2134_v57 = vld [vmem:[%s2701_s1 + $0x468] sm:$0xff]  }
  0x5a   :  { %1925 = vmatprep.subr.bf16.mxu1 %v2092_v60  ;;  %v2137_v60 = vld [vmem:[%s2701_s1 + $0x420] sm:$0xff]  }
  0x5b   :  { %1904 = vmatpush3.bf16.msra.mxu0 %v2091_v59  ;;  %v2136_v59 = vld [vmem:[%s2701_s1 + $0x460] sm:$0xff]  }
  0x5c   :  { %1905 = vmatprep.subr.bf16.mxu0 %v2094_v62  ;;  %v18_v62 = vld [vmem:[%s2700_s0 + $0x10] sm:$0x3] }
  0x5d   :  { %1926 = vmatpush3.bf16.msra.mxu1 %v2093_v61  ;;  %v2138_v61 = vld [vmem:[%s2701_s1 + $0x458] sm:$0xff]  }
  0x5e   :  { %1927 = vmatprep.subr.bf16.mxu1 %v2096_v0 }
  0x5f   :  { %1906 = vmatpush3.bf16.msra.mxu0 %v2095_v63  ;;  %v93_v63 = vrot.slane %v18_v62, %v2267_v27 }
  0x60   :  { %1935 = vmatprep.subr.bf16.mxu0 %v2098_v7 }
  0x61   :  { %1928 = vmatpush3.bf16.msra.mxu1 %v2097_v3 }
  0x62   :  { %1476 = vmatmul.mubr.bf16.vlgmr.msra.gmra.mxu0 %v120_v31  ;;  %1957 = vmatprep.subr.bf16.mxu1 %v2100_v13 }
  0x63   :  { %1936 = vmatpush3.bf16.msra.mxu0 %v2099_v33  ;;  %1555 = vmatprep.mubr.bf16.mxu0 %v125_v37 }
  0x64   :  { %1516 = vmatmul.mubr.bf16.vlgmr.msra.gmra.mxu1 %v122_v12  ;;  %1937 = vmatprep.subr.bf16.mxu0 %v2102_v17 }
  0x65   :  { %1958 = vmatpush3.bf16.msra.mxu1 %v2101_v35  ;;  %1595 = vmatprep.mubr.bf16.mxu1 %v127_v15 }
  0x66   :  { %1959 = vmatprep.subr.bf16.mxu1 %v2104_v19 }
  0x67   :  { %1938 = vmatpush3.bf16.msra.mxu0 %v2103_v18 }
  0x68   :  { %1939 = vmatprep.subr.bf16.mxu0 %v2106_v21 }
  0x69   :  { %1960 = vmatpush3.bf16.msra.mxu1 %v2105_v20 }
  0x6a   :  { %1961 = vmatprep.subr.bf16.mxu1 %v2108_v24 }
  0x6b   :  { %1940 = vmatpush3.bf16.msra.mxu0 %v2107_v23 }
  0x6c   :  { %1941 = vmatprep.subr.bf16.mxu0 %v2110_v26 }
  0x6d   :  { %1962 = vmatpush3.bf16.msra.mxu1 %v2109_v25 }
  0x6e   :  { %1963 = vmatprep.subr.bf16.mxu1 %v2112_v30 }
  0x6f   :  { %1942 = vmatpush3.bf16.msra.mxu0 %v2111_v28 }
  0x70   :  { %1943 = vmatprep.subr.bf16.mxu0 %v2114_v34 }
  0x71   :  { %1964 = vmatpush3.bf16.msra.mxu1 %v2113_v32 }
  0x72   :  { %1965 = vmatprep.subr.bf16.mxu1 %v2116_v38 }
  0x73   :  { %1944 = vmatpush3.bf16.msra.mxu0 %v2115_v36 }
  0x74   :  { %1945 = vmatprep.subr.bf16.mxu0 %v2118_v40 }
  0x75   :  { %1966 = vmatpush3.bf16.msra.mxu1 %v2117_v39 }
  0x76   :  { %1967 = vmatprep.subr.bf16.mxu1 %v2120_v42 }
  0x77   :  { %1946 = vmatpush3.bf16.msra.mxu0 %v2119_v41 }
  0x78   :  { %1947 = vmatprep.subr.bf16.mxu0 %v2122_v44 }
  0x79   :  { %1968 = vmatpush3.bf16.msra.mxu1 %v2121_v43 }
  0x7a   :  { %1969 = vmatprep.subr.bf16.mxu1 %v2124_v46 }
  0x7b   :  { %1948 = vmatpush3.bf16.msra.mxu0 %v2123_v45 }
  0x7c   :  { %1949 = vmatprep.subr.bf16.mxu0 %v2126_v48 }
  0x7d   :  { %1970 = vmatpush3.bf16.msra.mxu1 %v2125_v47 }
  0x7e   :  { %1971 = vmatprep.subr.bf16.mxu1 %v2128_v52 }
  0x7f   :  { %1950 = vmatpush3.bf16.msra.mxu0 %v2127_v50 }
  0x80   :  { %1979 = vmatprep.subr.bf16.mxu0 %v2130_v54 }
  0x81   :  { %1972 = vmatpush3.bf16.msra.mxu1 %v2129_v53 }
  0x82   :  { %1556 = vmatmul.mubr.bf16.vlgmr.msra.gmra.mxu0 %v124_v14 }
  0x83   :  { %1980 = vmatpush3.bf16.msra.mxu0 %v2131_v22 }
  0x84   :  { %1596 = vmatmul.mubr.bf16.vlgmr.msra.gmra.mxu1 %v126_v16  ;;  %1981 = vmatprep.subr.bf16.mxu0 %v2132_v55 }
  0x87   :  { %1982 = vmatpush3.bf16.msra.mxu0 %v2133_v56 }
  0x88   :  { %1983 = vmatprep.subr.bf16.mxu0 %v2134_v57 }
  0x8b   :  { %1984 = vmatpush3.bf16.msra.mxu0 %v2135_v58 }
  0x8c   :  { %1985 = vmatprep.subr.bf16.mxu0 %v2136_v59 }
  0x8d   :  { %8 = vsyncpa [#allocation3], 0  ;;  %v2139_v0 = vld [vmem:[%s2701_s1 + $0x418] sm:$0xff]   ;;  %v2140_v1 = vld [vmem:[%s2701_s1 + $0x450] sm:$0xff]   ;;  %v129_v2 = vpack.c.bf16 %v93_v63, %v93_v63  ;;  %v89_v6 = vrot.slane %v18_v62, %v2273_v29  ;;  %vm1643_vm0 = vcmask 778240  }
  0x8e   :  { %v2141_v3 = vld [vmem:[%s2701_s1 + $0x410] sm:$0xff]   ;;  %v2142_v27 = vld [vmem:[%s2701_s1 + $0x448] sm:$0xff]   ;;  %v2144_v5 = vld [vmem:[%s2701_s1 + $0x440] sm:$0xff]  }
  0x8f   :  { %1986 = vmatpush3.bf16.msra.mxu0 %v2137_v60  ;;  %1635 = vmatprep.mubr.bf16.mxu0 %v129_v2  ;;  %v2143_v4 = vld [vmem:[%s2701_s1 + $0x408] sm:$0xff]   ;;  %v2145_v7 = vld [vmem:[%s2701_s1 + $0x400] sm:$0xff]   ;;  %v128_v8 = vpack.c.bf16 %v89_v6, %v89_v6  ;;  %s2168_s1 = smov [#allocation2]  }
  0x90   :  { %1987 = vmatprep.subr.bf16.mxu0 %v2138_v61  ;;  %v418_v31 = vld [vmem:[%s2702_s2] sm:$0x1]  ;;  %s1651_s2 = sshll.u32 %s2168_s1, 4  ;;  %s1652_s2 = int_to_ptr.vmem [resolvable:$true] %s1651_s2 }
  0x91   :  { %s2146_s10 = scalar_lea.vmem %s1652_s2, 16  ;;  %s2150_s11 = scalar_lea.vmem %s1652_s2, 32 }
  0x92   :  { %p2147_p0 = scmp.ne.s32.totalorder %s1652_s2, %s2146_s10  ;;  %p2151_p1 = scmp.lt.s32.totalorder %s1652_s2, %s1652_s2 }
  0x93   :  { %1988 = vmatpush3.bf16.msra.mxu0 %v2139_v0  ;;  %p2152_p2 = scmp.lt.s32.totalorder %s2150_s11, %s2146_s10 }
  0x94   :  { %1989 = vmatprep.subr.bf16.mxu0 %v2140_v1 }
  0x95   :  { %p2153_p3 = por %p2152_p2, %p2151_p1 }
  0x97   :  { %1990 = vmatpush3.bf16.msra.mxu0 %v2141_v3  ;;  %p2154_p4 = pnand %p2153_p3, %p2147_p0 }
  0x98   :  { %1991 = vmatprep.subr.bf16.mxu0 %v2142_v27 }
  0x9b   :  { %1992 = vmatpush3.bf16.msra.mxu0 %v2143_v4 }
  0x9c   :  { %1993 = vmatprep.subr.bf16.mxu0 %v2144_v5 }
  0x9f   :  { %1994 = vmatpush3.bf16.msra.mxu0 %v2145_v7 }
  0xa2   :  { %1636 = vmatmul.mubr.bf16.vlgmr.msra.gmra.mxu0 %v128_v8 }
  0xe2   :  { %v1819_v9 = vpop.f32.mrf.mxu0 }
  0xe4   :  { %v1841_v10 = vpop.f32.mrf.mxu1  ;;  %v1820_v11 = vpop.f32.mrf.mxu0 }
  0xe5   :  { %v1821_v12 = vadd.f32 %v1820_v11, %v1819_v9 }
  0xe6   :  { %v1842_v33 = vpop.f32.mrf.mxu1  ;;  %v1822_v29 = vpop.f32.mrf.mxu0 }
  0xe7   :  { %v1843_v13 = vadd.f32 %v1842_v33, %v1841_v10  ;;  %v1318_v37 = vadd.f32 %v1821_v12, %v418_v31 }
  0xe8   :  { %v1844_v35 = vpop.f32.mrf.mxu1  ;;  %v1823_v15 = vpop.f32.mrf.mxu0 }
  0xe9   :  { %v1358_v18 = vadd.f32 %v1843_v13, %v1318_v37 }
  0xea   :  { %v1845_v17 = vpop.f32.mrf.mxu1 }
 0x102   :  { %v1863_v19 = vpop.f32.mrf.mxu0 }
 0x104   :  { %v1885_v20 = vpop.f32.mrf.mxu1  ;;  %v1864_v21 = vpop.f32.mrf.mxu0 }
 0x105   :  { %v1865_v23 = vadd.f32 %v1864_v21, %v1863_v19 }
 0x106   :  { %v1886_v24 = vpop.f32.mrf.mxu1  ;;  %v1866_v25 = vpop.f32.mrf.mxu0 }
 0x107   :  { %v1887_v26 = vadd.f32 %v1886_v24, %v1885_v20  ;;  %v1398_v28 = vadd.f32 %v1865_v23, %v1358_v18 }
 0x108   :  { %v1888_v30 = vpop.f32.mrf.mxu1  ;;  %v1867_v32 = vpop.f32.mrf.mxu0 }
 0x109   :  { %v1438_v34 = vadd.f32 %v1887_v26, %v1398_v28 }
 0x10a   :  { %v1889_v36 = vpop.f32.mrf.mxu1 }
 0x122   :  { %v1907_v38 = vpop.f32.mrf.mxu0 }
 0x124   :  { %v1929_v39 = vpop.f32.mrf.mxu1  ;;  %v1908_v40 = vpop.f32.mrf.mxu0 }
 0x125   :  { %v1909_v14 = vadd.f32 %v1908_v40, %v1907_v38 }
 0x126   :  { %v1930_v41 = vpop.f32.mrf.mxu1  ;;  %v1910_v42 = vpop.f32.mrf.mxu0 }
 0x127   :  { %v1478_v54 = vadd.f32 %v1909_v14, %v1438_v34  ;;  %v1931_v22 = vadd.f32 %v1930_v41, %v1929_v39 }
 0x128   :  { %v1932_v43 = vpop.f32.mrf.mxu1  ;;  %v1911_v44 = vpop.f32.mrf.mxu0 }
 0x129   :  { %v1518_v55 = vadd.f32 %v1931_v22, %v1478_v54 }
 0x12a   :  { %v1933_v45 = vpop.f32.mrf.mxu1 }
 0x142   :  { %v1951_v46 = vpop.f32.mrf.mxu0 }
 0x144   :  { %v1973_v47 = vpop.f32.mrf.mxu1  ;;  %v1952_v48 = vpop.f32.mrf.mxu0 }
 0x145   :  { %v1953_v16 = vadd.f32 %v1952_v48, %v1951_v46 }
 0x146   :  { %v1974_v49 = vpop.f32.mrf.mxu1  ;;  %v1954_v50 = vpop.f32.mrf.mxu0 }
 0x147   :  { %v1558_v56 = vadd.f32 %v1953_v16, %v1518_v55  ;;  %v1975_v57 = vadd.f32 %v1974_v49, %v1973_v47 }
 0x148   :  { %v1976_v51 = vpop.f32.mrf.mxu1  ;;  %v1955_v52 = vpop.f32.mrf.mxu0 }
 0x149   :  { %v1598_v60 = vadd.f32 %v1975_v57, %v1558_v56 }
 0x14a   :  { %v1977_v53 = vpop.f32.mrf.mxu1 }
 0x162   :  { %v1995_v58 = vpop.f32.mrf.mxu0 }
 0x164   :  { %v1996_v59 = vpop.f32.mrf.mxu0 }
 0x165   :  { %v1997_v61 = vadd.f32 %v1996_v59, %v1995_v58 }
 0x166   :  { %v1998_v62 = vpop.f32.mrf.mxu0 }
 0x167   :  { %v1638_v63 = vadd.f32 %v1997_v61, %v1598_v60 }
 0x168   :  { %v1999_v0 = vpop.f32.mrf.mxu0 }
 0x169   :  { %1644 = vst.msk [vmem:[#allocation2] sm:$0x1] %vm1643_vm0, %v1638_v63 }
 0x16a   :  { %2157 = shalt.err (!%p2154_p4)
}
 0x16b   :  { %1654 = dma.vmem_to_hbm [thread:$0]  %s1652_s2, 16, %s2703_s3, [#allocation3]  }
 0x16c   :  { %2166 = dma.done.wait [#allocation3], 16  }
 0x16d   :  { %2167 = vsyncadd [#allocation3], 4294967280 }
 0x16e   :  { %1658 = vsyncpa [#allocation3], 1 }

</bundles_post_ra>
